<compile_context>
chip_gen: v6e
topology: v6e:2x2x1
jax: 0.10.0
libtpu: 0.0.40
codegen_flags: <defaults>
</compile_context>

<pallas_src>
import functools
import math

import numpy as np
import jax
import jax.numpy as jnp
from jax.experimental import pallas as pl
from jax.experimental.pallas import tpu as pltpu

VMEM_LIMIT = 32 * 1024 * 1024          # explicit scoped-VMEM ceiling (v7x-safe)


def _round_up(x, m):
    return ((x + m - 1) // m) * m


def _choose_tm(m, cap=1024):
    """M tile: whole (8-aligned) M when small, else a 128-aligned large tile."""
    if m <= cap:
        return _round_up(m, 8)
    return cap


def _mosaic_params(*sem):
    return pltpu.CompilerParams(dimension_semantics=sem,
                                vmem_limit_bytes=VMEM_LIMIT)


# --------------------------------------------------------------------------
# Kernel 1: fused  Y = [residual + ls *] act( LN?(X) @ W + bias )
# Used for: patch embed, QKV / proj / MLP linears, and the 1x1 conv head.
# --------------------------------------------------------------------------
def _fmm_kernel(*refs, act, has_ln, has_res, eps):
    it = iter(refs)
    x_ref = next(it)
    w_ref = next(it)
    b_ref = next(it)
    if has_ln:
        g_ref = next(it)
        gb_ref = next(it)
    if has_res:
        r_ref = next(it)
        ls_ref = next(it)
    o_ref = next(it)

    x = x_ref[...]
    if has_ln:
        xf = x.astype(jnp.float32)
        mu = jnp.mean(xf, axis=-1, keepdims=True)
        xc = xf - mu
        var = jnp.mean(xc * xc, axis=-1, keepdims=True)
        xn = xc * jax.lax.rsqrt(var + eps)
        x = (xn * g_ref[...] + gb_ref[...]).astype(jnp.bfloat16)
    else:
        x = x.astype(jnp.bfloat16)

    acc = jnp.dot(x, w_ref[...], preferred_element_type=jnp.float32)
    acc = acc + b_ref[...]
    if act == "relu":
        acc = jnp.maximum(acc, 0.0)
    elif act == "gelu":
        # tanh-approximate GELU in f32 (EUP-friendly, v5e-safe).
        acc = 0.5 * acc * (1.0 + jnp.tanh(
            0.7978845608028654 * (acc + 0.044715 * acc * acc * acc)))
    if has_res:
        acc = r_ref[...].astype(jnp.float32) + ls_ref[...] * acc
    o_ref[...] = acc.astype(o_ref.dtype)


def fused_matmul(x, w, bias, *, ln=None, res=None, ls=None, act=None,
                 out_dtype=jnp.bfloat16, eps=1e-6):
    M, K = x.shape
    N = w.shape[1]
    TM = _choose_tm(M)
    Mp = _round_up(M, TM)
    pad = Mp - M
    if pad:
        x = jnp.pad(x, ((0, pad), (0, 0)))
        if res is not None:
            res = jnp.pad(res, ((0, pad), (0, 0)))

    has_ln = ln is not None
    has_res = res is not None

    inputs = [x, w, bias.reshape(1, N).astype(jnp.float32)]
    in_specs = [pl.BlockSpec((TM, K), lambda i: (i, 0)),
                pl.BlockSpec((K, N), lambda i: (0, 0)),
                pl.BlockSpec((1, N), lambda i: (0, 0))]
    if has_ln:
        g, b = ln
        inputs += [g.reshape(1, K).astype(jnp.float32),
                   b.reshape(1, K).astype(jnp.float32)]
        in_specs += [pl.BlockSpec((1, K), lambda i: (0, 0)),
                     pl.BlockSpec((1, K), lambda i: (0, 0))]
    if has_res:
        inputs += [res, ls.reshape(1, N).astype(jnp.float32)]
        in_specs += [pl.BlockSpec((TM, N), lambda i: (i, 0)),
                     pl.BlockSpec((1, N), lambda i: (0, 0))]

    out = pl.pallas_call(
        functools.partial(_fmm_kernel, act=act, has_ln=has_ln,
                          has_res=has_res, eps=eps),
        out_shape=jax.ShapeDtypeStruct((Mp, N), out_dtype),
        grid_spec=pltpu.PrefetchScalarGridSpec(
            num_scalar_prefetch=0,
            grid=(Mp // TM,),
            in_specs=in_specs,
            out_specs=pl.BlockSpec((TM, N), lambda i: (i, 0))),
        compiler_params=_mosaic_params("parallel"),
    )(*inputs)
    return out[:M] if pad else out


# --------------------------------------------------------------------------
# Kernel 2: LayerNorm over last dim (final encoder norm only)
# --------------------------------------------------------------------------
def _layernorm_kernel(x_ref, g_ref, b_ref, o_ref, *, eps):
    x = x_ref[...].astype(jnp.float32)
    mu = jnp.mean(x, axis=-1, keepdims=True)
    xc = x - mu
    var = jnp.mean(xc * xc, axis=-1, keepdims=True)
    y = xc * jax.lax.rsqrt(var + eps)
    o_ref[...] = (y * g_ref[...] + b_ref[...]).astype(o_ref.dtype)


def layernorm(x, g, b, eps=1e-6, out_dtype=jnp.bfloat16):
    M, D = x.shape
    TM = _choose_tm(M)
    Mp = _round_up(M, TM)
    pad = Mp - M
    if pad:
        x = jnp.pad(x, ((0, pad), (0, 0)))
    out = pl.pallas_call(
        functools.partial(_layernorm_kernel, eps=eps),
        out_shape=jax.ShapeDtypeStruct((Mp, D), out_dtype),
        grid_spec=pltpu.PrefetchScalarGridSpec(
            num_scalar_prefetch=0,
            grid=(Mp // TM,),
            in_specs=[pl.BlockSpec((TM, D), lambda i: (i, 0)),
                      pl.BlockSpec((1, D), lambda i: (0, 0)),
                      pl.BlockSpec((1, D), lambda i: (0, 0))],
            out_specs=pl.BlockSpec((TM, D), lambda i: (i, 0))),
        compiler_params=_mosaic_params("parallel"),
    )(x, g.reshape(1, D).astype(jnp.float32), b.reshape(1, D).astype(jnp.float32))
    return out[:M] if pad else out


# --------------------------------------------------------------------------
# Kernel 3: attention -- lane-dense (T, 3E) in / (T, E) out, one batch per step.
# Per-head q/k/v are lane slices; softmax scale folded into q.
# --------------------------------------------------------------------------
def _attn_kernel(qkv_ref, o_ref, *, heads, dh, scale):
    x = qkv_ref[...]                               # (T, 3E) bf16
    E = heads * dh
    outs = []
    for h in range(heads):
        q = x[:, h * dh:(h + 1) * dh] * scale      # T*dh mults, not T*T
        k = x[:, E + h * dh:E + (h + 1) * dh]
        v = x[:, 2 * E + h * dh:2 * E + (h + 1) * dh]
        s = jnp.einsum("td,sd->ts", q, k, preferred_element_type=jnp.float32)
        s = s - jnp.max(s, axis=-1, keepdims=True)
        p = jnp.exp(s)
        p = p * pl.reciprocal(jnp.sum(p, axis=-1, keepdims=True), approx=True)
        outs.append(jnp.dot(p.astype(v.dtype), v,
                            preferred_element_type=jnp.float32))
    o_ref[...] = jnp.concatenate(outs, axis=-1).astype(o_ref.dtype)


def attention(qkv, *, heads):
    # qkv: (B, T, 3E), E multiple of 128 -> unmasked lane-dense loads/stores.
    B, T, E3 = qkv.shape
    E = E3 // 3
    dh = E // heads
    scale = 1.0 / float(dh) ** 0.5
    # TODO(synk): for real DINOv2 sequence lengths (T~1370) switch to a KV-tiled
    # online-softmax (flash) loop; the full TxT scores fit VMEM only at small T.
    return pl.pallas_call(
        functools.partial(_attn_kernel, heads=heads, dh=dh, scale=scale),
        out_shape=jax.ShapeDtypeStruct((B, T, E), jnp.bfloat16),
        grid_spec=pltpu.PrefetchScalarGridSpec(
            num_scalar_prefetch=0,
            grid=(B,),
            in_specs=[pl.BlockSpec((None, T, E3), lambda b: (b, 0, 0))],
            out_specs=pl.BlockSpec((None, T, E), lambda b: (b, 0, 0))),
        compiler_params=_mosaic_params("parallel"),
    )(qkv)


# --------------------------------------------------------------------------
# Kernel 4: 3x3 SAME conv + folded BatchNorm (eval) + ReLU, channels-last.
# Vertical taps pre-stacked along K (fused K=3*Cin dots); horizontal taps via
# pltpu.roll of the tile (XLU) with boundary-column masking; row-aligned M tiles.
# --------------------------------------------------------------------------
def _conv3x3_kernel(x_ref, w_ref, s_ref, t_ref, o_ref, *, W):
    x = x_ref[...]                                  # (TM, 3*Cin) bf16
    rows = x.shape[0]
    col = jax.lax.broadcasted_iota(jnp.int32, (rows, 1), 0) % W
    acc = jnp.dot(x, w_ref[1], preferred_element_type=jnp.float32)        # kw = 1
    xl = pltpu.roll(x, shift=1, axis=0)             # neighbor at col-1 -> this col
    xl = jnp.where(col == 0, jnp.zeros_like(xl), xl)
    acc = acc + jnp.dot(xl, w_ref[0], preferred_element_type=jnp.float32)  # kw = 0
    xr = pltpu.roll(x, shift=rows - 1, axis=0)      # neighbor at col+1 -> this col
    xr = jnp.where(col == W - 1, jnp.zeros_like(xr), xr)
    acc = acc + jnp.dot(xr, w_ref[2], preferred_element_type=jnp.float32)  # kw = 2
    acc = acc * s_ref[...] + t_ref[...]             # folded BN (eval)
    o_ref[...] = jnp.maximum(acc, 0.0).astype(o_ref.dtype)


def conv3x3_bn_relu(x_nhwc, w3, scale, shift):
    B, H, W, Cin = x_nhwc.shape
    Cout = w3.shape[-1]
    # Stack the 3 vertical taps along channels on the host so each MXU dot has
    # K = 3*Cin and row tiling needs no halo (wrap rows hit masked columns only).
    xp = jnp.pad(x_nhwc, ((0, 0), (1, 1), (0, 0), (0, 0)))
    xs = jnp.concatenate([xp[:, 0:H], xp[:, 1:H + 1], xp[:, 2:H + 2]], axis=-1)
    M = B * H * W
    K = 3 * Cin
    xf = xs.reshape(M, K)
    if M <= 1024:
        TM = _round_up(M, 8)                        # single tile starting at row 0
    else:                                           # row-aligned: multiple of W and 8
        unit = (W * 8) // math.gcd(W, 8)
        TM = max(unit, (1024 // unit) * unit)
    Mp = _round_up(M, TM)
    if Mp > M:
        xf = jnp.pad(xf, ((0, Mp - M), (0, 0)))
    out = pl.pallas_call(
        functools.partial(_conv3x3_kernel, W=W),
        out_shape=jax.ShapeDtypeStruct((Mp, Cout), jnp.bfloat16),
        grid_spec=pltpu.PrefetchScalarGridSpec(
            num_scalar_prefetch=0,
            grid=(Mp // TM,),
            in_specs=[pl.BlockSpec((TM, K), lambda i: (i, 0)),
                      pl.BlockSpec((3, K, Cout), lambda i: (0, 0, 0)),
                      pl.BlockSpec((1, Cout), lambda i: (0, 0)),
                      pl.BlockSpec((1, Cout), lambda i: (0, 0))],
            out_specs=pl.BlockSpec((TM, Cout), lambda i: (i, 0))),
        compiler_params=_mosaic_params("parallel"),
    )(xf, w3, scale.reshape(1, Cout), shift.reshape(1, Cout))
    return out[:M].reshape(B, H, W, Cout)


# --------------------------------------------------------------------------
# Kernel 5: separable bilinear resize (align_corners=False), channels-last bf16.
# Height pass = one lane-dense MXU matmul; width pass = 2-tap lane-slice FMAs.
# --------------------------------------------------------------------------
def _bilinear_taps(n_in, n_out):
    """PyTorch Upsample(mode='bilinear', align_corners=False) source taps."""
    if n_in == 1:
        return tuple((0, 0, 0.0) for _ in range(n_out))
    taps = []
    scale = n_in / n_out
    for o in range(n_out):
        src = max((o + 0.5) * scale - 0.5, 0.0)
        i0 = min(int(np.floor(src)), n_in - 1)
        i1 = min(i0 + 1, n_in - 1)
        taps.append((i0, i1, float(src - i0)))
    return tuple(taps)


def _bilinear_matrix(n_in, n_out):
    R = np.zeros((n_out, n_in), np.float32)
    for o, (i0, i1, f) in enumerate(_bilinear_taps(n_in, n_out)):
        R[o, i0] += 1.0 - f
        R[o, i1] += f
    return R


def _resize_kernel(r_ref, x_ref, o_ref, *, C, w_taps):
    # Height pass: (Ho, Hi) @ (Hi, Wi*C) bf16 on the MXU, f32 accumulate.
    t = jnp.dot(r_ref[...], x_ref[...], preferred_element_type=jnp.float32)
    # Width pass: each output column mixes <= 2 source columns -> static,
    # 128-aligned lane slices + VPU FMAs (no Kronecker matrix, no transposes).
    for wo, (i0, i1, f) in enumerate(w_taps):
        left = t[:, i0 * C:(i0 + 1) * C]
        if i1 == i0 or f == 0.0:
            piece = left
        else:
            piece = left * (1.0 - f) + t[:, i1 * C:(i1 + 1) * C] * f
        o_ref[:, wo * C:(wo + 1) * C] = piece.astype(o_ref.dtype)


def bilinear_resize_nhwc(x, out_size):
    B, Hi, Wi, C = x.shape
    Ho, Wo = out_size
    r_h = jnp.asarray(_bilinear_matrix(Hi, Ho)).astype(jnp.bfloat16)
    w_taps = _bilinear_taps(Wi, Wo)
    xf = x.reshape(B, Hi, Wi * C)
    # TODO(synk): at very large decoder resolutions add a lane-chunk grid axis so
    # the per-step block stays inside the 32 MiB scoped-VMEM budget.
    out = pl.pallas_call(
        functools.partial(_resize_kernel, C=C, w_taps=w_taps),
        out_shape=jax.ShapeDtypeStruct((B, Ho, Wo * C), jnp.bfloat16),
        grid_spec=pltpu.PrefetchScalarGridSpec(
            num_scalar_prefetch=0,
            grid=(B,),
            in_specs=[pl.BlockSpec((Ho, Hi), lambda b: (0, 0)),
                      pl.BlockSpec((None, Hi, Wi * C), lambda b: (b, 0, 0))],
            out_specs=pl.BlockSpec((None, Ho, Wo * C), lambda b: (b, 0, 0))),
        compiler_params=_mosaic_params("parallel"),
    )(r_h, xf)
    return out.reshape(B, Ho, Wo, C)


# --------------------------------------------------------------------------
# Encoder (DINOv2-style ViT, scaled down)
# --------------------------------------------------------------------------
def vit_block(x, p, heads):
    B, T, E = x.shape
    xf = x.reshape(B * T, E)

    # attention branch: LN fused into the QKV matmul; per-head work stays inside
    # the attention kernel; residual + LayerScale fused into the proj epilogue.
    qkv = fused_matmul(xf, p["w_qkv"], p["b_qkv"], ln=(p["ln1_g"], p["ln1_b"]))
    a = attention(qkv.reshape(B, T, 3 * E), heads=heads)       # (B, T, E)
    x1 = fused_matmul(a.reshape(B * T, E), p["w_proj"], p["b_proj"],
                      res=xf, ls=p["ls1"])

    # MLP branch
    m = fused_matmul(x1, p["w_fc1"], p["b_fc1"],
                     ln=(p["ln2_g"], p["ln2_b"]), act="gelu")
    x2 = fused_matmul(m, p["w_fc2"], p["b_fc2"], res=x1, ls=p["ls2"])
    return x2.reshape(B, T, E)


def encoder_forward(x_nchw, params):
    B, C, H, W = x_nchw.shape
    E = params["embed_dim"]
    P = 14
    h0, w0 = H // P, W // P

    # patch embed (14x14 stride-14 conv == non-overlapping im2col + matmul);
    # cast to bf16 BEFORE the im2col relayouts to halve their HBM traffic.
    x = jnp.transpose(x_nchw.astype(jnp.bfloat16), (0, 2, 3, 1))
    x = x.reshape(B, h0, P, w0, P, C)
    x = jnp.transpose(x, (0, 1, 3, 2, 4, 5)).reshape(B * h0 * w0, P * P * C)
    tok = fused_matmul(x, params["patch_w"], params["patch_b"])
    tok = tok.reshape(B, h0 * w0, E)

    cls = jnp.broadcast_to(params["cls_token"].astype(jnp.bfloat16), (B, 1, E))
    t = jnp.concatenate([cls, tok], axis=1) + params["pos_embed"].astype(jnp.bfloat16)

    for p in params["blocks"]:
        t = vit_block(t, p, params["num_heads"])

    # final norm; 'x_norm_patchtokens' = normed patch tokens (cls dropped)
    patch_tokens = t[:, 1:, :].reshape(B * h0 * w0, E)
    fea = layernorm(patch_tokens, params["ln_g"], params["ln_b"])
    return fea.reshape(B, h0, w0, E)                           # NHWC, bf16


# --------------------------------------------------------------------------
# Decoder (SETR_PUP), channels-last with lane-padded channel dim
# --------------------------------------------------------------------------
def decoder_forward(fea_nhwc, size, dp, num_classes):
    n1, n2 = size
    out_sizes = [(n1 // 8, n2 // 8), (n1 // 4, n2 // 4), (n1 // 2, n2 // 2), (n1, n2)]
    x = fea_nhwc
    for stage_size, blk in zip(out_sizes, dp["blocks"]):
        for conv in (blk["conv1"], blk["conv2"]):
            x = conv3x3_bn_relu(x, conv["w"], conv["scale"], conv["shift"])
        x = bilinear_resize_nhwc(x, stage_size)
    B, H, W, C = x.shape
    # 1x1 conv head: bf16 writeback (halves HBM traffic of the most mem-bound
    # kernel); slice to the real classes and cast to f32 on the small result.
    y = fused_matmul(x.reshape(B * H * W, C), dp["head_w"], dp["head_b"],
                     out_dtype=jnp.bfloat16)
    y = y[:, :num_classes].astype(jnp.float32).reshape(B, H, W, num_classes)
    return jnp.transpose(y, (0, 3, 1, 2))                      # NCHW f32


def dinov2_pup_forward(x, size, params):
    fea = encoder_forward(x, params)
    return decoder_forward(fea, size, params["decoder"], params["num_classes"])


# --------------------------------------------------------------------------
# Deterministic parameter init (synthetic; no checkpoint loading)
# --------------------------------------------------------------------------
def init_params(key, *, embed_dim=128, depth=2, num_heads=2, num_classes=4,
                num_patches=4, mlp_ratio=4):
    keys = iter(jax.random.split(key, 256))
    bf = jnp.bfloat16

    def nrm(shape, s=0.02):
        return s * jax.random.normal(next(keys), shape, jnp.float32)

    E = embed_dim
    params = dict(embed_dim=E, num_heads=num_heads, num_classes=num_classes)
    params["patch_w"] = nrm((14 * 14 * 3, E)).astype(bf)
    params["patch_b"] = nrm((E,))
    params["cls_token"] = nrm((1, 1, E))
    params["pos_embed"] = nrm((1, num_patches + 1, E))

    hidden = mlp_ratio * E
    blocks = []
    for _ in range(depth):
        blocks.append(dict(
            ln1_g=1.0 + nrm((E,), 0.05), ln1_b=nrm((E,), 0.05),
            w_qkv=nrm((E, 3 * E)).astype(bf), b_qkv=nrm((3 * E,)),
            w_proj=nrm((E, E)).astype(bf), b_proj=nrm((E,)),
            ls1=jnp.full((E,), 1e-5, jnp.float32),
            ln2_g=1.0 + nrm((E,), 0.05), ln2_b=nrm((E,), 0.05),
            w_fc1=nrm((E, hidden)).astype(bf), b_fc1=nrm((hidden,)),
            w_fc2=nrm((hidden, E)).astype(bf), b_fc2=nrm((E,)),
            ls2=jnp.full((E,), 1e-5, jnp.float32),
        ))
    params["blocks"] = blocks
    params["ln_g"] = 1.0 + nrm((E,), 0.05)
    params["ln_b"] = nrm((E,), 0.05)

    # SETR_PUP decoder: 4 x (conv3x3+BN+ReLU)x2 + upsample, then 1x1 conv head.
    # Channel dims are zero-padded to a multiple of 128 for lane-dense kernels;
    # padded weight/scale/shift stay exactly zero so ReLU keeps padded lanes at 0.
    extra = E // 4
    CP = _round_up(extra, 128)
    NCP = _round_up(num_classes, 128)

    def conv_bn(cin_real, cin_pad, cout_real):
        # layout: w[kw, kh*cin_pad + ci, co] == PyTorch W[co, ci, kh, kw]
        kfull = nrm((3, 3, cin_real, cout_real), 0.05)         # (kh, kw, ci, co)
        w = jnp.zeros((3, 3 * cin_pad, CP), jnp.float32)
        for kw in range(3):
            for kh in range(3):
                w = w.at[kw, kh * cin_pad:kh * cin_pad + cin_real,
                         :cout_real].set(kfull[kh, kw])
        b = nrm((cout_real,), 0.05)
        gamma = 1.0 + nrm((cout_real,), 0.1)
        beta = nrm((cout_real,), 0.1)
        rmean = nrm((cout_real,), 0.1)
        rvar = 1.0 + jnp.abs(nrm((cout_real,), 0.1))
        inv = gamma * jax.lax.rsqrt(rvar + 1e-5)
        scale = jnp.zeros((CP,), jnp.float32).at[:cout_real].set(inv)
        shift = jnp.zeros((CP,), jnp.float32).at[:cout_real].set((b - rmean) * inv + beta)
        return dict(w=w.astype(bf), scale=scale, shift=shift)

    dec_blocks = []
    for cin_real, cin_pad in [(E, E), (extra, CP), (extra, CP), (extra, CP)]:
        dec_blocks.append(dict(conv1=conv_bn(cin_real, cin_pad, extra),
                               conv2=conv_bn(extra, CP, extra)))
    head_w = jnp.zeros((CP, NCP), jnp.float32).at[:extra, :num_classes].set(
        nrm((extra, num_classes), 0.05))
    head_b = jnp.zeros((NCP,), jnp.float32).at[:num_classes].set(nrm((num_classes,)))
    params["decoder"] = dict(blocks=dec_blocks,
                             head_w=head_w.astype(bf), head_b=head_b)
    return params


if __name__ == "__main__":
    key = jax.random.PRNGKey(0)
    k_x, k_p = jax.random.split(key)
    B, H, W = 2, 28, 28                        # H, W multiples of patch size 14
    NUM_CLASSES = 4
    x = jax.random.normal(k_x, (B, 3, H, W), jnp.float32)
    params = init_params(k_p, embed_dim=128, depth=2, num_heads=2,
                         num_classes=NUM_CLASSES,
                         num_patches=(H // 14) * (W // 14))
    out = dinov2_pup_forward(x, (H, W), params)
    out = jax.block_until_ready(out)
    assert out.shape == (B, NUM_CLASSES, H, W), out.shape
    assert bool(jnp.all(jnp.isfinite(out)))
    print("KERNEL_OK")
</pallas_src>

<mosaic_0001>
module attributes {stable_mosaic.version = 11 : i64} {
  func.func @_fmm_kernel(%arg0: i32, %arg1: memref<8x588xbf16, #tpu.memory_space<vmem>>, %arg2: memref<588x128xbf16, #tpu.memory_space<vmem>>, %arg3: memref<1x128xf32, #tpu.memory_space<vmem>>, %arg4: memref<8x128xbf16, #tpu.memory_space<vmem>>) attributes {dimension_semantics = [#tpu.dimension_semantics<parallel>], iteration_bounds = array<i64: 1>, scalar_prefetch = 0 : i64, scratch_operands = 0 : i64, tpu.core_type = #tpu.core_type<tc>, window_params = [{transform_indices = @transform_0, window_bounds = array<i64: 8, 588>}, {pipeline_mode = #tpu.pipeline_mode<synchronous>, transform_indices = @transform_1, window_bounds = array<i64: 588, 128>}, {pipeline_mode = #tpu.pipeline_mode<synchronous>, transform_indices = @transform_2, window_bounds = array<i64: 1, 128>}, {transform_indices = @transform_3, window_bounds = array<i64: 8, 128>}]} {
    %c0 = arith.constant 0 : index
    %c0_0 = arith.constant 0 : index
    %0 = vector.load %arg1[%c0, %c0_0] : memref<8x588xbf16, #tpu.memory_space<vmem>>, vector<8x588xbf16>
    %c0_1 = arith.constant 0 : index
    %c0_2 = arith.constant 0 : index
    %1 = vector.load %arg2[%c0_1, %c0_2] : memref<588x128xbf16, #tpu.memory_space<vmem>>, vector<588x128xbf16>
    %cst = arith.constant dense<0.000000e+00> : vector<8x128xf32>
    %2 = tpu.matmul %0, %1, %cst {dimension_numbers = #tpu.dot_dimension_numbers<[1], [0], [0], [1], [0, 0, 1, 1], [], []>} : vector<8x588xbf16>, vector<588x128xbf16>, vector<8x128xf32> -> vector<8x128xf32>
    %c0_3 = arith.constant 0 : index
    %c0_4 = arith.constant 0 : index
    %3 = vector.load %arg3[%c0_3, %c0_4] : memref<1x128xf32, #tpu.memory_space<vmem>>, vector<1x128xf32>
    %4 = vector.broadcast %3 : vector<1x128xf32> to vector<8x128xf32>
    %5 = arith.addf %2, %4 : vector<8x128xf32>
    %6 = arith.truncf %5 : vector<8x128xf32> to vector<8x128xbf16>
    %c0_5 = arith.constant 0 : index
    %c0_6 = arith.constant 0 : index
    %7 = vector.load %arg4[%c0_5, %c0_6] : memref<8x128xbf16, #tpu.memory_space<vmem>>, vector<8x128xbf16>
    tpu.vector_store %arg4[%c0_5, %c0_6], %6 {strides = array<i32>} : memref<8x128xbf16, #tpu.memory_space<vmem>>, vector<8x128xbf16>,
    return
  }
  func.func @transform_0(%arg0: i32) -> (i32, i32) {
    %c0_i32 = arith.constant 0 : i32
    %c0_i32_0 = arith.constant 0 : i32
    return %arg0, %c0_i32 : i32, i32
  }
  func.func @transform_1(%arg0: i32) -> (i32, i32) {
    %c0_i32 = arith.constant 0 : i32
    %c0_i32_0 = arith.constant 0 : i32
    %c0_i32_1 = arith.constant 0 : i32
    return %c0_i32, %c0_i32_0 : i32, i32
  }
  func.func @transform_2(%arg0: i32) -> (i32, i32) {
    %c0_i32 = arith.constant 0 : i32
    %c0_i32_0 = arith.constant 0 : i32
    %c0_i32_1 = arith.constant 0 : i32
    return %c0_i32, %c0_i32_0 : i32, i32
  }
  func.func @transform_3(%arg0: i32) -> (i32, i32) {
    %c0_i32 = arith.constant 0 : i32
    %c0_i32_0 = arith.constant 0 : i32
    return %arg0, %c0_i32 : i32, i32
  }
}

</mosaic_0001>

<bundles_post_ra>
// kernel: tpu_custom_call.1
= control target key start
LH: loop header
LB: loop body
LE: loop exit
PB: predicated region body
PF: predicated region fallthrough
CT: control target
= control target key end

     0   :  { %8 = vsyncpa [#allocation3], 0  ;;  %s772_s0 = inlined_call_operand.hbm [shape: bf16[8,588], index: 0, kind: input, shape index: {}]   ;;  %s773_s1 = inlined_call_operand.hbm [shape: bf16[588,128], index: 1, kind: input, shape index: {}]   ;;  %s774_s2 = inlined_call_operand.vmem [shape: f32[1,128], index: 2, kind: input, shape index: {}]   ;;  %s775_s3 = inlined_call_operand.hbm [shape: bf16[8,128], index: 3, kind: output, shape index: {}]  }
   0x1   :  { %9 = vsyncpa [#allocation6], 0 }
   0x2   :  { %10 = vsyncpa [#allocation4], 0  ;;  %s733_s12 = smov [#allocation2]   ;;  %s734_s14 = smov [#allocation5]  }
   0x3   :  { %s17_s13 = sshll.u32 %s733_s12, 4  ;;  %s26_s15 = sshll.u32 %s734_s14, 4  ;;  %s18_s13 = int_to_ptr.vmem [resolvable:$true] %s17_s13  ;;  %s27_s15 = int_to_ptr.vmem [resolvable:$true] %s26_s15 }
   0x4   :  { %s675_s16 = scalar_lea.vmem %s18_s13, 320  ;;  %p680_p1 = scmp.lt.s32.totalorder %s18_s13, %s18_s13 }
   0x5   :  { %p676_p0 = scmp.ne.s32.totalorder %s18_s13, %s675_s16  ;;  %p681_p2 = scmp.lt.s32.totalorder %s675_s16, %s675_s16 }
   0x7   :  { %p682_p3 = por %p681_p2, %p680_p1 }
   0x9   :  { %p683_p4 = pnand %p682_p3, %p676_p0 }
   0xb   :  { %686 = shalt.err (!%p683_p4)
}
   0xc   :  { %20 = dma.hbm_to_vmem [thread:$0]  %s772_s0, 320, %s18_s13, [#allocation3]  }
   0xd   :  { %s695_s19 = scalar_lea.vmem %s27_s15, 4736  ;;  %p700_p6 = scmp.lt.s32.totalorder %s27_s15, %s27_s15 }
   0xe   :  { %p696_p5 = scmp.ne.s32.totalorder %s27_s15, %s695_s19  ;;  %p701_p7 = scmp.lt.s32.totalorder %s695_s19, %s695_s19 }
  0x10   :  { %p702_p8 = por %p701_p7, %p700_p6 }
  0x12   :  { %p703_p9 = pnand %p702_p8, %p696_p5 }
  0x14   :  { %706 = shalt.err (!%p703_p9)
}
  0x15   :  { %s735_s20 = smov 64   ;;  %s736_s21 = smov 4  }
  0x16   :  { %32 = dma.hbm_to_vmem [thread:$0]  %s773_s1, 4736, %s27_s15, [#allocation6], %s735_s20, %s735_s20, %s736_s21  }
  0x17   :  { %727 = dma.done.wait [#allocation3], 320  }
  0x18   :  { %728 = vsyncadd [#allocation3], 4294966976 }
  0x19   :  { %729 = dma.done.wait [#allocation6], 4736  }
  0x1a   :  { %730 = vsyncadd [#allocation6], 4294962560  ;;  %v625_v0 = vld [vmem:[#allocation5 + $0x78] sm:$0xff]   ;;  %v629_v4 = vld [vmem:[#allocation5 + $0x70] sm:$0xff]   ;;  %v737_v35 = vmov 0.0   ;;  %vm368_vm0 = vcmask 1045504  }
  0x1b   :  { %v626_v1 = vld [vmem:[#allocation5 + $0x38] sm:$0xff]   ;;  %554 = vmatprep.subr.bf16.mxu0 %v625_v0  ;;  %v630_v5 = vld [vmem:[#allocation5 + $0x30] sm:$0xff]   ;;  %v633_v8 = vld [vmem:[#allocation5 + $0x68] sm:$0xff]   ;;  %vm738_vm1 = vmmov 0   ;;  %vm364_vm2 = vcmask 621568   ;;  %s739_s24 = smov [#allocation7]  }
  0x1c   :  { %v627_v2 = vld [vmem:[#allocation5 + $0xf8] sm:$0xff]   ;;  %555 = vmatpush3.bf16.msra.mxu0 %v626_v1  ;;  %v631_v6 = vld [vmem:[#allocation5 + $0xf0] sm:$0xff]   ;;  %v634_v9 = vld [vmem:[#allocation5 + $0x28] sm:$0xff]   ;;  %s500_s25 = sshll.u32 %s739_s24, 4  ;;  %s501_s25 = int_to_ptr.vmem [resolvable:$true] %s500_s25 }
  0x1d   :  { %v628_v3 = vld [vmem:[#allocation5 + $0xb8] sm:$0xff]   ;;  %576 = vmatprep.subr.bf16.mxu1 %v627_v2  ;;  %556 = vmatprep.subr.bf16.mxu0 %v629_v4  ;;  %v632_v7 = vld [vmem:[#allocation5 + $0xb0] sm:$0xff]   ;;  %v635_v10 = vld [vmem:[#allocation5 + $0xe8] sm:$0xff]   ;;  %s707_s26 = scalar_lea.vmem %s501_s25, 64  ;;  %p712_p11 = scmp.lt.s32.totalorder %s501_s25, %s501_s25 }
  0x1e   :  { %577 = vmatpush3.bf16.msra.mxu1 %v628_v3  ;;  %v636_v11 = vld [vmem:[#allocation5 + $0xa8] sm:$0xff]   ;;  %v637_v12 = vld [vmem:[#allocation5 + $0x60] sm:$0xff]   ;;  %v641_v16 = vld [vmem:[#allocation5 + $0x58] sm:$0xff]   ;;  %p708_p10 = scmp.ne.s32.totalorder %s501_s25, %s707_s26  ;;  %p713_p12 = scmp.lt.s32.totalorder %s707_s26, %s707_s26 }
  0x1f   :  { %578 = vmatprep.subr.bf16.mxu1 %v631_v6  ;;  %v638_v13 = vld [vmem:[#allocation5 + $0x20] sm:$0xff]   ;;  %v642_v17 = vld [vmem:[#allocation5 + $0x18] sm:$0xff]   ;;  %v645_v20 = vld [vmem:[#allocation5 + $0x50] sm:$0xff]  }
  0x20   :  { %557 = vmatpush3.bf16.msra.mxu0 %v630_v5  ;;  %v639_v14 = vld [vmem:[#allocation5 + $0xe0] sm:$0xff]   ;;  %v643_v18 = vld [vmem:[#allocation5 + $0xd8] sm:$0xff]   ;;  %v646_v21 = vld [vmem:[#allocation5 + $0x10] sm:$0xff]   ;;  %p714_p13 = por %p713_p12, %p712_p11 }
  0x21   :  { %558 = vmatprep.subr.bf16.mxu0 %v633_v8  ;;  %v640_v15 = vld [vmem:[#allocation5 + $0xa0] sm:$0xff]   ;;  %v644_v19 = vld [vmem:[#allocation5 + $0x98] sm:$0xff]   ;;  %v647_v22 = vld [vmem:[#allocation5 + $0xd0] sm:$0xff]  }
  0x22   :  { %579 = vmatpush3.bf16.msra.mxu1 %v632_v7  ;;  %v648_v23 = vld [vmem:[#allocation5 + $0x90] sm:$0xff]   ;;  %v649_v24 = vld [vmem:[#allocation5 + $0x48] sm:$0xff]   ;;  %v653_v28 = vld [vmem:[#allocation5 + $0x40] sm:$0xff]   ;;  %p715_p0 = pnand %p714_p13, %p708_p10 }
  0x23   :  { %580 = vmatprep.subr.bf16.mxu1 %v635_v10  ;;  %v650_v25 = vld [vmem:[#allocation5 + $0x8] sm:$0xff]   ;;  %v654_v29 = vld [vmem:[#allocation5] sm:$0xff]   ;;  %v43_v36 = vld [vmem:[#allocation2 + $0x8] sm:$0xff] }
  0x24   :  { %559 = vmatpush3.bf16.msra.mxu0 %v634_v9  ;;  %v651_v26 = vld [vmem:[#allocation5 + $0xc8] sm:$0xff]   ;;  %v655_v30 = vld [vmem:[#allocation5 + $0xc0] sm:$0xff]   ;;  %v513_v37 = vcombine.low %v43_v36, %v43_v36  ;;  %v514_v38 = vcombine.high %v43_v36, %v43_v36  ;;  %v662_v41 = vld [vmem:[#allocation5 + $0x118] sm:$0xff]  }
  0x25   :  { %560 = vmatprep.subr.bf16.mxu0 %v637_v12  ;;  %v652_v27 = vld [vmem:[#allocation5 + $0x88] sm:$0xff]   ;;  %v658_v34 = vld [vmem:[#allocation5 + $0x80] sm:$0xff]   ;;  %v663_v42 = vld [vmem:[#allocation5 + $0x110] sm:$0xff]  }
  0x26   :  { %581 = vmatpush3.bf16.msra.mxu1 %v636_v11  ;;  %v42_v31 = vld [vmem:[#allocation2] sm:$0xff]  ;;  %v661_v39 = vld [vmem:[#allocation5 + $0x120] sm:$0x3f]   ;;  %444 = vmatprep.mubr.bf16.mxu1 %v514_v38  ;;  %v666_v45 = vld [vmem:[#allocation2 + $0x10] ss:$0 sps:$4 sm:$0xff]  }
  0x27   :  { %582 = vmatprep.subr.bf16.mxu1 %v639_v14  ;;  %v511_v32 = vcombine.low %v42_v31, %v42_v31  ;;  %v512_v33 = vcombine.high %v42_v31, %v42_v31  ;;  %v370_v40 = vsel %vm368_vm0, %v661_v39, 0  ;;  %v664_v43 = vld [vmem:[#allocation5 + $0x108] sm:$0xff]   ;;  %v665_v44 = vld [vmem:[#allocation5 + $0x100] sm:$0xff]  }
  0x28   :  { %561 = vmatpush3.bf16.msra.mxu0 %v638_v13  ;;  %v510_v55 = vld [vmem:[%s774_s2] ss:$0 sm:$0xff] }
  0x29   :  { %562 = vmatprep.subr.bf16.mxu0 %v641_v16  ;;  %404 = vmatprep.mubr.bf16.mxu0 %v512_v33 }
  0x2a   :  { %583 = vmatpush3.bf16.msra.mxu1 %v640_v15 }
  0x2b   :  { %584 = vmatprep.subr.bf16.mxu1 %v643_v18 }
  0x2c   :  { %563 = vmatpush3.bf16.msra.mxu0 %v642_v17 }
  0x2d   :  { %564 = vmatprep.subr.bf16.mxu0 %v645_v20 }
  0x2e   :  { %585 = vmatpush3.bf16.msra.mxu1 %v644_v19 }
  0x2f   :  { %586 = vmatprep.subr.bf16.mxu1 %v647_v22 }
  0x30   :  { %565 = vmatpush3.bf16.msra.mxu0 %v646_v21 }
  0x31   :  { %566 = vmatprep.subr.bf16.mxu0 %v649_v24 }
  0x32   :  { %587 = vmatpush3.bf16.msra.mxu1 %v648_v23 }
  0x33   :  { %588 = vmatprep.subr.bf16.mxu1 %v651_v26 }
  0x34   :  { %567 = vmatpush3.bf16.msra.mxu0 %v650_v25 }
  0x35   :  { %568 = vmatprep.subr.bf16.mxu0 %v653_v28 }
  0x36   :  { %589 = vmatpush3.bf16.msra.mxu1 %v652_v27 }
  0x37   :  { %590 = vmatprep.subr.bf16.mxu1 %v655_v30 }
  0x38   :  { %569 = vmatpush3.bf16.msra.mxu0 %v654_v29 }
  0x39   :  { %604 = vmatprep.subr.bf16.mxu0 %v737_v35 }
  0x3a   :  { %591 = vmatpush3.bf16.msra.mxu1 %v658_v34 }
  0x3b   :  { %405 = vmatmul.mubr.bf16.vlgmr.msra.gmra.mxu0 %v511_v32 }
  0x3c   :  { %605 = vmatpush3.bf16.msra.mxu0 %v370_v40  ;;  %614 = vmatprep.mubr.msk.bf16.mxu0 %vm738_vm1, %v737_v35 }
  0x3d   :  { %445 = vmatmul.mubr.bf16.vlgmr.msra.gmra.mxu1 %v513_v37  ;;  %606 = vmatprep.subr.bf16.mxu0 %v737_v35 }
  0x40   :  { %607 = vmatpush3.bf16.msra.mxu0 %v662_v41 }
  0x41   :  { %608 = vmatprep.subr.bf16.mxu0 %v737_v35 }
  0x44   :  { %609 = vmatpush3.bf16.msra.mxu0 %v663_v42 }
  0x45   :  { %610 = vmatprep.subr.bf16.mxu0 %v737_v35 }
  0x48   :  { %611 = vmatpush3.bf16.msra.mxu0 %v664_v43 }
  0x49   :  { %612 = vmatprep.subr.bf16.mxu0 %v737_v35 }
  0x4c   :  { %613 = vmatpush3.bf16.msra.mxu0 %v665_v44 }
  0x4f   :  { %615 = vmatmul.mubr.msk.bf16.vlgmr.msra.gmra.mxu0 %vm364_vm2, %v666_v45 }
  0xfb   :  { %v570_v46 = vpop.f32.mrf.mxu0 }
  0xfd   :  { %v571_v47 = vpop.f32.mrf.mxu0  ;;  %v592_v48 = vpop.f32.mrf.mxu1 }
  0xfe   :  { %v572_v54 = vadd.f32 %v571_v47, %v570_v46 }
  0xff   :  { %v573_v49 = vpop.f32.mrf.mxu0  ;;  %v593_v50 = vpop.f32.mrf.mxu1 }
 0x100   :  { %v407_v56 = vadd.f32 %v572_v54, %v510_v55  ;;  %v594_v57 = vadd.f32 %v593_v50, %v592_v48 }
 0x101   :  { %v574_v51 = vpop.f32.mrf.mxu0  ;;  %v595_v52 = vpop.f32.mrf.mxu1 }
 0x102   :  { %v447_v58 = vadd.f32 %v594_v57, %v407_v56 }
 0x103   :  { %v596_v53 = vpop.f32.mrf.mxu1 }
 0x10f   :  { %v486_v59 = vpop.f32.mrf.mxu0 }
 0x110   :  { %v487_v60 = vadd.f32 %v486_v59, %v447_v58 }
 0x111   :  { %v616_v61 = vpop.f32.mrf.mxu0 }
 0x112   :  { %v492_v62 = vpack.c.bf16 %v487_v60, %v487_v60 }
 0x113   :  { %v489_v63 = vpop.f32.mrf.mxu0 }
 0x114   :  { %493 = vst [vmem:[#allocation7] sm:$0xf] %v492_v62 }
 0x115   :  { %v617_v0 = vpop.f32.mrf.mxu0 }
 0x116   :  { %718 = shalt.err (!%p715_p0)
}
 0x117   :  { %503 = dma.vmem_to_hbm [thread:$0]  %s501_s25, 64, %s775_s3, [#allocation4]  }
 0x118   :  { %731 = dma.done.wait [#allocation4], 64  }
 0x119   :  { %732 = vsyncadd [#allocation4], 4294967232 }
 0x11a   :  { %507 = vsyncpa [#allocation3], 1 }
 0x11b   :  { %508 = vsyncpa [#allocation6], 1 }
 0x11c   :  { %509 = vsyncpa [#allocation4], 1 }

</bundles_post_ra>
